<compile_context>
chip_gen: v6e
topology: v6e:2x2x1
jax: 0.10.0
libtpu: 0.0.40
codegen_flags: <defaults>
</compile_context>

<pallas_src>
import functools

import numpy as np
import jax
import jax.numpy as jnp
from jax import lax
from jax.experimental import pallas as pl
from jax.experimental.pallas import tpu as pltpu

MAX_LENGTH = 256
NUM_LANDMARKS = 543
NUM_COORDS = 3
FULL_DIM = NUM_LANDMARKS * NUM_COORDS          # 1629
NUM_SEL = 90                                   # 21 (lhand) + 21 (rhand) + 40 (lip) + 8 (spose)
SEL_FLAT = NUM_SEL * NUM_COORDS                # 270

TRIU_INDEX = [1, 2, 3, 4, 5, 6, 7, 8, 9, 10, 11, 12, 13, 14, 15, 16, 17, 18, 19, 20, 23, 24, 25, 26, 27, 28, 29, 30, 31, 32, 33, 34, 35, 36, 37, 38, 39, 40, 41, 45, 46, 47, 48, 49, 50, 51, 52, 53, 54, 55, 56, 57, 58, 59, 60, 61, 62, 67, 68, 69, 70, 71, 72, 73, 74, 75, 76, 77, 78, 79, 80, 81, 82, 83, 89, 90, 91, 92, 93, 94, 95, 96, 97, 98, 99, 100, 101, 102, 103, 104, 111, 112, 113, 114, 115, 116, 117, 118, 119, 120, 121, 122, 123, 124, 125, 133, 134, 135, 136, 137, 138, 139, 140, 141, 142, 143, 144, 145, 146, 155, 156, 157, 158, 159, 160, 161, 162, 163, 164, 165, 166, 167, 177, 178, 179, 180, 181, 182, 183, 184, 185, 186, 187, 188, 199, 200, 201, 202, 203, 204, 205, 206, 207, 208, 209, 221, 222, 223, 224, 225, 226, 227, 228, 229, 230, 243, 244, 245, 246, 247, 248, 249, 250, 251, 265, 266, 267, 268, 269, 270, 271, 272, 287, 288, 289, 290, 291, 292, 293, 309, 310, 311, 312, 313, 314, 331, 332, 333, 334, 335, 353, 354, 355, 356, 375, 376, 377, 397, 398, 419]
LIP = [61, 146, 91, 181, 84, 17, 314, 405, 321, 375, 291, 78, 95, 88, 178, 87, 14, 317, 402, 318, 324, 308, 191, 80, 81, 82, 13, 312, 311, 310, 415, 185, 40, 39, 37, 0, 267, 269, 270, 409]
SPOSE = [500, 502, 504, 501, 503, 505, 512, 513]

# Deterministic non-trainable "parameter" from __init__ (crop offset table).
OFFSET = np.clip((np.arange(1000) - MAX_LENGTH) // 2, 0, 1000).astype(np.int64)

# (i, j) pairs (i < j) whose row-major flat index equals TRIU_INDEX.
PAIR_I, PAIR_J = np.triu_indices(21, k=1)
assert (PAIR_I * 21 + PAIR_J).tolist() == TRIU_INDEX
NUM_PAIRS = PAIR_I.shape[0]                    # 210
PDIFF_DIM = 4 * NUM_PAIRS                      # 840  lane-dense [ldx | ldy | rdx | rdy]
OUT_DIM = 3 * SEL_FLAT + 2 * NUM_PAIRS         # 1230

STAT_TILE = 512                                # frame tile for the HBM stats scan


def _input_net_kernel(full_ref, sel_ref, pdiff_ref, out_ref,
                      stats_ref, df_ref, db_ref, ld_ref, rd_ref, *,
                      total_rows, tile_rows, has_tail):
    """Grid axis 0 tiles the UNCROPPED frames (reduction axis, 'arbitrary').

    stats_ref (SMEM, f32[3]) accumulates [count, sum, sum_of_squares] of the
    non-NaN elements.  sel_ref / pdiff_ref / out_ref use constant block
    indices so they stay resident in VMEM across the grid.
    """
    pid = pl.program_id(0)
    last = pl.num_programs(0) - 1

    # ---- step 0: init accumulators + hoist the stat-INDEPENDENT epilogue
    #      (raw temporal diffs, raw pair-distance sqrt) so it overlaps the
    #      remaining reduction DMAs instead of running on the serial tail. ----
    @pl.when(pid == 0)
    def _init_and_hoist():
        stats_ref[0] = jnp.float32(0.0)
        stats_ref[1] = jnp.float32(0.0)
        stats_ref[2] = jnp.float32(0.0)

        # Temporal diffs on RAW coordinates (the global mean cancels; only
        # the 1/std scale is applied in the finalize step).
        sel_raw = sel_ref[...]                               # (Lc, 270)
        zrow = jnp.zeros((1, SEL_FLAT), jnp.float32)
        d = sel_raw[:-1, :] - sel_raw[1:, :]                 # (Lc-1, 270)
        df_ref[...] = jnp.concatenate([d, zrow], axis=0)     # forward diff
        db_ref[...] = jnp.concatenate([zrow, -d], axis=0)    # backward diff
        # TODO(synk): pltpu.roll(axis=0) could build df/db without the two
        # concats; kept the proven slice+concat since this phase is now
        # overlapped with the stats DMAs anyway.

        # Raw pairwise hand distances from pre-differenced coordinates
        # (NaNs propagate and are scrubbed in the finalize store).
        pd_ = pdiff_ref[...]                                 # (Lc, 840)
        ldx = pd_[:, 0 * NUM_PAIRS:1 * NUM_PAIRS]
        ldy = pd_[:, 1 * NUM_PAIRS:2 * NUM_PAIRS]
        rdx = pd_[:, 2 * NUM_PAIRS:3 * NUM_PAIRS]
        rdy = pd_[:, 3 * NUM_PAIRS:4 * NUM_PAIRS]
        ld_ref[...] = jnp.sqrt(ldx * ldx + ldy * ldy)
        rd_ref[...] = jnp.sqrt(rdx * rdx + rdy * rdy)
        # TODO(synk): the pair differencing itself could move onto the idle
        # in-kernel MXU via a constant +-1 selection matmul (dropping the
        # wrapper-side gathers and the (Lc,840) operand), at the cost of an
        # exact-f32 matmul path plus explicit NaN-pair masking.

    # ---- NaN-masked partial reduction over this frame tile.  The per-row
    #      bounds mask is only applied on the (single) ragged tail tile. ----
    def _accumulate(mask_tail_rows):
        full = full_ref[...]                                 # (TL, 1629)
        ok = jnp.logical_not(jnp.isnan(full))
        if mask_tail_rows:
            row = pid * tile_rows + lax.broadcasted_iota(jnp.int32, full.shape, 0)
            ok = jnp.logical_and(ok, row < total_rows)
        fz = jnp.where(ok, full, 0.0)
        stats_ref[0] = stats_ref[0] + jnp.sum(ok.astype(jnp.float32))
        stats_ref[1] = stats_ref[1] + jnp.sum(fz)
        stats_ref[2] = stats_ref[2] + jnp.sum(fz * fz)

    if not has_tail:
        _accumulate(False)
    else:
        @pl.when(pid != last)
        def _steady():
            _accumulate(False)

        @pl.when(pid == last)
        def _tail():
            _accumulate(True)

    # ---- last step: finalize the stats, scale, fuse, scrub, single store. ----
    @pl.when(pid == last)
    def _finalize():
        cnt = stats_ref[0]
        s = stats_ref[1]
        ss = stats_ref[2]
        has = cnt > 0.0
        safe_cnt = jnp.maximum(cnt, 1.0)
        mean = jnp.where(has, s / safe_cnt, 0.0)
        # Single-pass unbiased (ddof=1) variance; the clamp keeps f32
        # cancellation from going negative.  cnt==1 still yields NaN/inf
        # scaling on purpose (matches torch: everything NaN -> scrubbed to 0).
        # TODO(synk): a Chan/Welford-style per-tile combine would be more
        # robust for inputs with a large common offset.
        centered_ss = jnp.maximum(ss - s * (s / safe_cnt), 0.0)
        var = centered_ss / (cnt - 1.0)
        std = jnp.where(has, jnp.sqrt(var), 1.0)
        inv_std = jnp.where(has, 1.0 / std, 1.0)     # scalar reciprocal, multiply below

        sel = (sel_ref[...] - mean) * inv_std                 # (Lc, 270)
        df = df_ref[...] * inv_std                            # (Lc, 270)
        db = db_ref[...] * inv_std                            # (Lc, 270)
        ld = ld_ref[...] * inv_std                            # (Lc, 210)
        rd = rd_ref[...] * inv_std                            # (Lc, 210)

        fused = jnp.concatenate([sel, df, db, ld, rd], axis=-1)   # (Lc, 1230)
        out_ref[...] = jnp.where(jnp.isnan(fused), 0.0, fused)


@jax.jit
def input_net_forward(xyz):
    """xyz: (L, 543, 3) float32 (may contain NaN) -> (Lc, 1230) float32."""
    xyz = xyz.astype(jnp.float32)
    l0 = xyz.shape[0]
    full_flat = xyz.reshape(l0, FULL_DIM)

    # crop (static, depends only on the static length L)
    if l0 > MAX_LENGTH:
        i = int(OFFSET[l0])
        xyz_c = lax.slice_in_dim(xyz, i, i + MAX_LENGTH, axis=0)
    else:
        xyz_c = xyz
    lc = xyz_c.shape[0]

    lhand = xyz_c[:, 468:489]                                   # (Lc, 21, 3)
    rhand = xyz_c[:, 522:543]                                   # (Lc, 21, 3)
    lip = xyz_c[:, np.asarray(LIP)]                             # (Lc, 40, 3)
    spose = xyz_c[:, np.asarray(SPOSE)]                         # (Lc, 8, 3)
    sel = jnp.concatenate([lhand, rhand, lip, spose], axis=1)   # (Lc, 90, 3)
    sel_flat = sel.reshape(lc, SEL_FLAT)

    # Pre-differenced hand pair coordinates (mean cancels; kernel only
    # rescales) in ONE lane-dense (Lc, 840) slab: [ldx | ldy | rdx | rdy].
    lx, ly = lhand[:, :, 0], lhand[:, :, 1]
    rx, ry = rhand[:, :, 0], rhand[:, :, 1]
    pdiff = jnp.concatenate([lx[:, PAIR_I] - lx[:, PAIR_J],
                             ly[:, PAIR_I] - ly[:, PAIR_J],
                             rx[:, PAIR_I] - rx[:, PAIR_J],
                             ry[:, PAIR_I] - ry[:, PAIR_J]], axis=1)  # (Lc, 840)

    # Frame tile for the stat reduction: whole clip if short, else 512-row
    # tiles; the single ragged tail tile (if any) is masked in-kernel.
    tl = l0 if l0 <= STAT_TILE else STAT_TILE
    nsteps = pl.cdiv(l0, tl)
    has_tail = (l0 % tl) != 0

    kernel = functools.partial(_input_net_kernel, total_rows=l0,
                               tile_rows=tl, has_tail=has_tail)

    cost = pl.CostEstimate(
        flops=4 * l0 * FULL_DIM + 12 * lc * SEL_FLAT + 8 * lc * NUM_PAIRS
              + 4 * lc * OUT_DIM,
        transcendentals=2 * lc * NUM_PAIRS + 1,
        bytes_accessed=4 * (l0 * FULL_DIM + lc * SEL_FLAT + lc * PDIFF_DIM
                            + lc * OUT_DIM),
    )

    out = pl.pallas_call(
        kernel,
        out_shape=jax.ShapeDtypeStruct((lc, OUT_DIM), jnp.float32),
        grid_spec=pltpu.PrefetchScalarGridSpec(
            num_scalar_prefetch=0,
            grid=(nsteps,),
            in_specs=[
                # Big uncropped input: tiled over frames, pipelined.
                pl.BlockSpec((tl, FULL_DIM), lambda i: (i, 0)),
                # Small cropped tensors: resident across the grid.
                pl.BlockSpec((lc, SEL_FLAT), lambda i: (0, 0)),
                pl.BlockSpec((lc, PDIFF_DIM), lambda i: (0, 0)),
            ],
            out_specs=pl.BlockSpec((lc, OUT_DIM), lambda i: (0, 0)),
            scratch_shapes=[
                pltpu.SMEM((3,), jnp.float32),                 # [cnt, sum, sumsq]
                pltpu.VMEM((lc, SEL_FLAT), jnp.float32),       # raw forward diff
                pltpu.VMEM((lc, SEL_FLAT), jnp.float32),       # raw backward diff
                pltpu.VMEM((lc, NUM_PAIRS), jnp.float32),      # raw left-hand dists
                pltpu.VMEM((lc, NUM_PAIRS), jnp.float32),      # raw right-hand dists
            ],
        ),
        compiler_params=pltpu.CompilerParams(
            dimension_semantics=("arbitrary",),          # reduction axis
            vmem_limit_bytes=24 * 1024 * 1024,           # ~13 MiB real need + headroom
        ),
        cost_estimate=cost,
    )(full_flat, sel_flat, pdiff)

    return out                                                  # (Lc, 1230)


def reference_forward_numpy(xyz):
    """Pure NumPy transcription of the PyTorch forward (for a sanity check)."""
    xyz = np.asarray(xyz, dtype=np.float32).copy()
    L = xyz.shape[0]
    not_nan = xyz[~np.isnan(xyz)]
    if not_nan.size != 0:
        xyz = xyz - not_nan.mean()
        xyz = xyz / xyz[~np.isnan(xyz)].std(ddof=1)
    if L > MAX_LENGTH:
        i = int(OFFSET[L])
        xyz = xyz[i:i + MAX_LENGTH]
    L = xyz.shape[0]
    lhand = xyz[:, 468:489]
    rhand = xyz[:, 522:543]
    lhand2 = lhand[:, :21, :2]
    ld = lhand2.reshape(-1, 21, 1, 2) - lhand2.reshape(-1, 1, 21, 2)
    ld = np.sqrt((ld ** 2).sum(-1)).reshape(L, -1)[:, TRIU_INDEX]
    rhand2 = rhand[:, :21, :2]
    rd = rhand2.reshape(-1, 21, 1, 2) - rhand2.reshape(-1, 1, 21, 2)
    rd = np.sqrt((rd ** 2).sum(-1)).reshape(L, -1)[:, TRIU_INDEX]
    xcat = np.concatenate([lhand, rhand, xyz[:, LIP], xyz[:, SPOSE]], axis=1)
    zero = np.zeros((1,) + xcat.shape[1:], np.float32)
    dfxyz = np.concatenate([xcat[:-1] - xcat[1:], zero], axis=0)
    dbxyz = np.concatenate([zero, xcat[1:] - xcat[:-1]], axis=0)
    x = np.concatenate([xcat.reshape(L, -1), dfxyz.reshape(L, -1),
                        dbxyz.reshape(L, -1), ld, rd], axis=-1)
    x[np.isnan(x)] = 0
    return x


if __name__ == "__main__":
    key = jax.random.PRNGKey(0)
    k1, k2 = jax.random.split(key)

    def make_input(k, L):
        xyz = jax.random.uniform(k, (L, NUM_LANDMARKS, NUM_COORDS), jnp.float32)
        # Deterministically drop some landmarks to exercise the NaN path.
        xyz = xyz.at[0, 468:475, :].set(jnp.nan)   # part of left hand, frame 0
        xyz = xyz.at[3, 61, :].set(jnp.nan)        # a lip landmark, frame 3
        xyz = xyz.at[5, 522:525, 1].set(jnp.nan)   # right-hand y coords, frame 5
        return xyz

    # Case 1: short clip -> no crop, single-step reduction.
    xyz1 = make_input(k1, 8)
    out1 = jax.block_until_ready(input_net_forward(xyz1))
    assert out1.shape == (8, OUT_DIM)              # (8, 1230)
    np.testing.assert_allclose(np.asarray(out1),
                               reference_forward_numpy(np.asarray(xyz1)),
                               rtol=2e-3, atol=2e-3)

    # Case 2: long clip -> crop to 256 frames, multi-tile stats reduction with
    # a masked ragged tail (600 = 512 + 88), NaNs inside and outside the crop.
    xyz2 = make_input(k2, 600)
    xyz2 = xyz2.at[400, 522:543, 0].set(jnp.nan)   # inside the crop window
    xyz2 = xyz2.at[100, 0:10, :].set(jnp.nan)      # outside the crop window (stats only)
    out2 = jax.block_until_ready(input_net_forward(xyz2))
    assert out2.shape == (MAX_LENGTH, OUT_DIM)     # (256, 1230)
    np.testing.assert_allclose(np.asarray(out2),
                               reference_forward_numpy(np.asarray(xyz2)),
                               rtol=2e-3, atol=2e-3)

    print("KERNEL_OK")
</pallas_src>

<mosaic_0001>
module attributes {stable_mosaic.version = 11 : i64} {
  func.func @_input_net_kernel(%arg0: i32, %arg1: memref<8x1629xf32, #tpu.memory_space<vmem>>, %arg2: memref<8x270xf32, #tpu.memory_space<vmem>>, %arg3: memref<8x840xf32, #tpu.memory_space<vmem>>, %arg4: memref<8x1230xf32, #tpu.memory_space<vmem>>, %arg5: memref<3xf32, #tpu.memory_space<smem>>, %arg6: memref<8x270xf32, #tpu.memory_space<vmem>>, %arg7: memref<8x270xf32, #tpu.memory_space<vmem>>, %arg8: memref<8x210xf32, #tpu.memory_space<vmem>>, %arg9: memref<8x210xf32, #tpu.memory_space<vmem>>) attributes {dimension_semantics = [#tpu.dimension_semantics<arbitrary>], iteration_bounds = array<i64: 1>, scalar_prefetch = 0 : i64, scratch_operands = 5 : i64, tpu.core_type = #tpu.core_type<tc>, window_params = [{transform_indices = @transform_0, window_bounds = array<i64: 8, 1629>}, {pipeline_mode = #tpu.pipeline_mode<synchronous>, transform_indices = @transform_1, window_bounds = array<i64: 8, 270>}, {pipeline_mode = #tpu.pipeline_mode<synchronous>, transform_indices = @transform_2, window_bounds = array<i64: 8, 840>}, {pipeline_mode = #tpu.pipeline_mode<synchronous>, transform_indices = @transform_3, window_bounds = array<i64: 8, 1230>}]} {
    %c0_i32 = arith.constant 0 : i32
    %0 = arith.cmpi eq, %arg0, %c0_i32 : i32
    %1 = arith.extui %0 : i1 to i32
    %c0_i32_0 = arith.constant 0 : i32
    %2 = arith.cmpi ne, %1, %c0_i32_0 : i32
    scf.if %2 {
      %cst_12 = arith.constant 0.000000e+00 : f32
      %c0_13 = arith.constant 0 : index
      %35 = memref.load %arg5[%c0_13] : memref<3xf32, #tpu.memory_space<smem>>
      memref.store %cst_12, %arg5[%c0_13] : memref<3xf32, #tpu.memory_space<smem>>
      %cst_14 = arith.constant 0.000000e+00 : f32
      %c1_15 = arith.constant 1 : index
      %36 = memref.load %arg5[%c1_15] : memref<3xf32, #tpu.memory_space<smem>>
      memref.store %cst_14, %arg5[%c1_15] : memref<3xf32, #tpu.memory_space<smem>>
      %cst_16 = arith.constant 0.000000e+00 : f32
      %c2_17 = arith.constant 2 : index
      %37 = memref.load %arg5[%c2_17] : memref<3xf32, #tpu.memory_space<smem>>
      memref.store %cst_16, %arg5[%c2_17] : memref<3xf32, #tpu.memory_space<smem>>
      %c0_18 = arith.constant 0 : index
      %c0_19 = arith.constant 0 : index
      %38 = vector.load %arg2[%c0_18, %c0_19] : memref<8x270xf32, #tpu.memory_space<vmem>>, vector<8x270xf32>
      %cst_20 = arith.constant 0.000000e+00 : f32
      %39 = vector.broadcast %cst_20 : f32 to vector<1x270xf32>
      %40 = vector.extract_strided_slice %38 {offsets = [0, 0], sizes = [7, 270], strides = [1, 1]} : vector<8x270xf32> to vector<7x270xf32>
      %41 = vector.extract_strided_slice %38 {offsets = [1, 0], sizes = [7, 270], strides = [1, 1]} : vector<8x270xf32> to vector<7x270xf32>
      %42 = arith.subf %40, %41 : vector<7x270xf32>
      %43 = tpu.concatenate %42, %39 in 0 : vector<7x270xf32>, vector<1x270xf32> -> vector<8x270xf32>
      %c0_21 = arith.constant 0 : index
      %c0_22 = arith.constant 0 : index
      %44 = vector.load %arg6[%c0_21, %c0_22] : memref<8x270xf32, #tpu.memory_space<vmem>>, vector<8x270xf32>
      tpu.vector_store %arg6[%c0_21, %c0_22], %43 {strides = array<i32>} : memref<8x270xf32, #tpu.memory_space<vmem>>, vector<8x270xf32>,
      %cst_23 = arith.constant 0.000000e+00 : f32
      %45 = vector.broadcast %cst_23 : f32 to vector<7x270xf32>
      %46 = arith.subf %45, %42 : vector<7x270xf32>
      %47 = tpu.concatenate %39, %46 in 0 : vector<1x270xf32>, vector<7x270xf32> -> vector<8x270xf32>
      %c0_24 = arith.constant 0 : index
      %c0_25 = arith.constant 0 : index
      %48 = vector.load %arg7[%c0_24, %c0_25] : memref<8x270xf32, #tpu.memory_space<vmem>>, vector<8x270xf32>
      tpu.vector_store %arg7[%c0_24, %c0_25], %47 {strides = array<i32>} : memref<8x270xf32, #tpu.memory_space<vmem>>, vector<8x270xf32>,
      %c0_26 = arith.constant 0 : index
      %c0_27 = arith.constant 0 : index
      %49 = vector.load %arg3[%c0_26, %c0_27] : memref<8x840xf32, #tpu.memory_space<vmem>>, vector<8x840xf32>
      %50 = vector.extract_strided_slice %49 {offsets = [0, 0], sizes = [8, 210], strides = [1, 1]} : vector<8x840xf32> to vector<8x210xf32>
      %51 = vector.extract_strided_slice %49 {offsets = [0, 210], sizes = [8, 210], strides = [1, 1]} : vector<8x840xf32> to vector<8x210xf32>
      %52 = vector.extract_strided_slice %49 {offsets = [0, 420], sizes = [8, 210], strides = [1, 1]} : vector<8x840xf32> to vector<8x210xf32>
      %53 = vector.extract_strided_slice %49 {offsets = [0, 630], sizes = [8, 210], strides = [1, 1]} : vector<8x840xf32> to vector<8x210xf32>
      %54 = arith.mulf %50, %50 : vector<8x210xf32>
      %55 = arith.mulf %51, %51 : vector<8x210xf32>
      %56 = arith.addf %54, %55 : vector<8x210xf32>
      %57 = math.sqrt %56 : vector<8x210xf32>
      %c0_28 = arith.constant 0 : index
      %c0_29 = arith.constant 0 : index
      %58 = vector.load %arg8[%c0_28, %c0_29] : memref<8x210xf32, #tpu.memory_space<vmem>>, vector<8x210xf32>
      tpu.vector_store %arg8[%c0_28, %c0_29], %57 {strides = array<i32>} : memref<8x210xf32, #tpu.memory_space<vmem>>, vector<8x210xf32>,
      %59 = arith.mulf %52, %52 : vector<8x210xf32>
      %60 = arith.mulf %53, %53 : vector<8x210xf32>
      %61 = arith.addf %59, %60 : vector<8x210xf32>
      %62 = math.sqrt %61 : vector<8x210xf32>
      %c0_30 = arith.constant 0 : index
      %c0_31 = arith.constant 0 : index
      %63 = vector.load %arg9[%c0_30, %c0_31] : memref<8x210xf32, #tpu.memory_space<vmem>>, vector<8x210xf32>
      tpu.vector_store %arg9[%c0_30, %c0_31], %62 {strides = array<i32>} : memref<8x210xf32, #tpu.memory_space<vmem>>, vector<8x210xf32>,
    } else {
    }
    %c0 = arith.constant 0 : index
    %c0_1 = arith.constant 0 : index
    %3 = vector.load %arg1[%c0, %c0_1] : memref<8x1629xf32, #tpu.memory_space<vmem>>, vector<8x1629xf32>
    %4 = arith.cmpf one, %3, %3 : vector<8x1629xf32>
    %cst = arith.constant dense<true> : vector<8x1629xi1>
    %5 = arith.xori %4, %cst : vector<8x1629xi1>
    %cst_2 = arith.constant 0.000000e+00 : f32
    %6 = vector.broadcast %cst_2 : f32 to vector<8x1629xf32>
    %7 = arith.select %5, %3, %6 : vector<8x1629xi1>, vector<8x1629xf32>
    %c0_3 = arith.constant 0 : index
    %8 = memref.load %arg5[%c0_3] : memref<3xf32, #tpu.memory_space<smem>>
    %9 = arith.extui %5 : vector<8x1629xi1> to vector<8x1629xi32>
    %10 = arith.sitofp %9 : vector<8x1629xi32> to vector<8x1629xf32>
    %11 = vector.shape_cast %10 : vector<8x1629xf32> to vector<1x8x1629xf32>
    %cst_4 = arith.constant dense<0.000000e+00> : vector<1xf32>
    %12 = vector.multi_reduction <add>, %11, %cst_4 [1, 2] : vector<1x8x1629xf32> to vector<1xf32>
    %13 = vector.shape_cast %12 : vector<1xf32> to vector<1x1x1xf32>
    %14 = vector.extract %13[0, 0, 0] : f32 from vector<1x1x1xf32>
    %15 = arith.addf %8, %14 : f32
    %c0_5 = arith.constant 0 : index
    %16 = memref.load %arg5[%c0_5] : memref<3xf32, #tpu.memory_space<smem>>
    memref.store %15, %arg5[%c0_5] : memref<3xf32, #tpu.memory_space<smem>>
    %c1 = arith.constant 1 : index
    %17 = memref.load %arg5[%c1] : memref<3xf32, #tpu.memory_space<smem>>
    %18 = vector.shape_cast %7 : vector<8x1629xf32> to vector<1x8x1629xf32>
    %cst_6 = arith.constant dense<0.000000e+00> : vector<1xf32>
    %19 = vector.multi_reduction <add>, %18, %cst_6 [1, 2] : vector<1x8x1629xf32> to vector<1xf32>
    %20 = vector.shape_cast %19 : vector<1xf32> to vector<1x1x1xf32>
    %21 = vector.extract %20[0, 0, 0] : f32 from vector<1x1x1xf32>
    %22 = arith.addf %17, %21 : f32
    %c1_7 = arith.constant 1 : index
    %23 = memref.load %arg5[%c1_7] : memref<3xf32, #tpu.memory_space<smem>>
    memref.store %22, %arg5[%c1_7] : memref<3xf32, #tpu.memory_space<smem>>
    %c2 = arith.constant 2 : index
    %24 = memref.load %arg5[%c2] : memref<3xf32, #tpu.memory_space<smem>>
    %25 = arith.mulf %7, %7 : vector<8x1629xf32>
    %26 = vector.shape_cast %25 : vector<8x1629xf32> to vector<1x8x1629xf32>
    %cst_8 = arith.constant dense<0.000000e+00> : vector<1xf32>
    %27 = vector.multi_reduction <add>, %26, %cst_8 [1, 2] : vector<1x8x1629xf32> to vector<1xf32>
    %28 = vector.shape_cast %27 : vector<1xf32> to vector<1x1x1xf32>
    %29 = vector.extract %28[0, 0, 0] : f32 from vector<1x1x1xf32>
    %30 = arith.addf %24, %29 : f32
    %c2_9 = arith.constant 2 : index
    %31 = memref.load %arg5[%c2_9] : memref<3xf32, #tpu.memory_space<smem>>
    memref.store %30, %arg5[%c2_9] : memref<3xf32, #tpu.memory_space<smem>>
    %c0_i32_10 = arith.constant 0 : i32
    %32 = arith.cmpi eq, %arg0, %c0_i32_10 : i32
    %33 = arith.extui %32 : i1 to i32
    %c0_i32_11 = arith.constant 0 : i32
    %34 = arith.cmpi ne, %33, %c0_i32_11 : i32
    scf.if %34 {
      %c0_12 = arith.constant 0 : index
      %35 = memref.load %arg5[%c0_12] : memref<3xf32, #tpu.memory_space<smem>>
      %c1_13 = arith.constant 1 : index
      %36 = memref.load %arg5[%c1_13] : memref<3xf32, #tpu.memory_space<smem>>
      %c2_14 = arith.constant 2 : index
      %37 = memref.load %arg5[%c2_14] : memref<3xf32, #tpu.memory_space<smem>>
      %cst_15 = arith.constant 0.000000e+00 : f32
      %38 = arith.cmpf ogt, %35, %cst_15 : f32
      %cst_16 = arith.constant 1.000000e+00 : f32
      %39 = arith.maximumf %35, %cst_16 : f32
      %40 = arith.divf %36, %39 : f32
      %cst_17 = arith.constant 0.000000e+00 : f32
      %41 = arith.select %38, %40, %cst_17 : f32
      %42 = arith.divf %36, %39 : f32
      %43 = arith.mulf %36, %42 : f32
      %44 = arith.subf %37, %43 : f32
      %cst_18 = arith.constant 0.000000e+00 : f32
      %45 = arith.maximumf %44, %cst_18 : f32
      %cst_19 = arith.constant 1.000000e+00 : f32
      %46 = arith.subf %35, %cst_19 : f32
      %47 = arith.divf %45, %46 : f32
      %48 = math.sqrt %47 : f32
      %cst_20 = arith.constant 1.000000e+00 : f32
      %49 = arith.select %38, %48, %cst_20 : f32
      %cst_21 = arith.constant 1.000000e+00 : f32
      %50 = arith.divf %cst_21, %49 : f32
      %cst_22 = arith.constant 1.000000e+00 : f32
      %51 = arith.select %38, %50, %cst_22 : f32
      %c0_23 = arith.constant 0 : index
      %c0_24 = arith.constant 0 : index
      %52 = vector.load %arg2[%c0_23, %c0_24] : memref<8x270xf32, #tpu.memory_space<vmem>>, vector<8x270xf32>
      %53 = vector.broadcast %41 : f32 to vector<8x270xf32>
      %54 = arith.subf %52, %53 : vector<8x270xf32>
      %55 = vector.broadcast %51 : f32 to vector<8x270xf32>
      %56 = arith.mulf %54, %55 : vector<8x270xf32>
      %c0_25 = arith.constant 0 : index
      %c0_26 = arith.constant 0 : index
      %57 = vector.load %arg6[%c0_25, %c0_26] : memref<8x270xf32, #tpu.memory_space<vmem>>, vector<8x270xf32>
      %58 = vector.broadcast %51 : f32 to vector<8x270xf32>
      %59 = arith.mulf %57, %58 : vector<8x270xf32>
      %c0_27 = arith.constant 0 : index
      %c0_28 = arith.constant 0 : index
      %60 = vector.load %arg7[%c0_27, %c0_28] : memref<8x270xf32, #tpu.memory_space<vmem>>, vector<8x270xf32>
      %61 = vector.broadcast %51 : f32 to vector<8x270xf32>
      %62 = arith.mulf %60, %61 : vector<8x270xf32>
      %c0_29 = arith.constant 0 : index
      %c0_30 = arith.constant 0 : index
      %63 = vector.load %arg8[%c0_29, %c0_30] : memref<8x210xf32, #tpu.memory_space<vmem>>, vector<8x210xf32>
      %64 = vector.broadcast %51 : f32 to vector<8x210xf32>
      %65 = arith.mulf %63, %64 : vector<8x210xf32>
      %c0_31 = arith.constant 0 : index
      %c0_32 = arith.constant 0 : index
      %66 = vector.load %arg9[%c0_31, %c0_32] : memref<8x210xf32, #tpu.memory_space<vmem>>, vector<8x210xf32>
      %67 = vector.broadcast %51 : f32 to vector<8x210xf32>
      %68 = arith.mulf %66, %67 : vector<8x210xf32>
      %69 = tpu.concatenate %56, %59, %62, %65, %68 in 1 : vector<8x270xf32>, vector<8x270xf32>, vector<8x270xf32>, vector<8x210xf32>, vector<8x210xf32> -> vector<8x1230xf32>
      %70 = arith.cmpf one, %69, %69 : vector<8x1230xf32>
      %cst_33 = arith.constant 0.000000e+00 : f32
      %71 = vector.broadcast %cst_33 : f32 to vector<8x1230xf32>
      %72 = arith.select %70, %71, %69 : vector<8x1230xi1>, vector<8x1230xf32>
      %c0_34 = arith.constant 0 : index
      %c0_35 = arith.constant 0 : index
      %73 = vector.load %arg4[%c0_34, %c0_35] : memref<8x1230xf32, #tpu.memory_space<vmem>>, vector<8x1230xf32>
      tpu.vector_store %arg4[%c0_34, %c0_35], %72 {strides = array<i32>} : memref<8x1230xf32, #tpu.memory_space<vmem>>, vector<8x1230xf32>,
    } else {
    }
    return
  }
  func.func @transform_0(%arg0: i32) -> (i32, i32) {
    %c0_i32 = arith.constant 0 : i32
    %c0_i32_0 = arith.constant 0 : i32
    return %arg0, %c0_i32 : i32, i32
  }
  func.func @transform_1(%arg0: i32) -> (i32, i32) {
    %c0_i32 = arith.constant 0 : i32
    %c0_i32_0 = arith.constant 0 : i32
    %c0_i32_1 = arith.constant 0 : i32
    return %c0_i32, %c0_i32_0 : i32, i32
  }
  func.func @transform_2(%arg0: i32) -> (i32, i32) {
    %c0_i32 = arith.constant 0 : i32
    %c0_i32_0 = arith.constant 0 : i32
    %c0_i32_1 = arith.constant 0 : i32
    return %c0_i32, %c0_i32_0 : i32, i32
  }
  func.func @transform_3(%arg0: i32) -> (i32, i32) {
    %c0_i32 = arith.constant 0 : i32
    %c0_i32_0 = arith.constant 0 : i32
    %c0_i32_1 = arith.constant 0 : i32
    return %c0_i32, %c0_i32_0 : i32, i32
  }
}

</mosaic_0001>

<bundles_post_ra>
// kernel: input_net_forward.1
= control target key start
LH: loop header
LB: loop body
LE: loop exit
PB: predicated region body
PF: predicated region fallthrough
CT: control target
= control target key end

     0   :  { %vm572_vm4 = vmmov 1   ;;  %v573_v7 = vmov 0.0   ;;  %s776_s0 = inlined_call_operand.vmem [shape: f32[8,1629], index: 0, kind: input, shape index: {}]   ;;  %s777_s1 = inlined_call_operand.vmem [shape: f32[8,270], index: 1, kind: input, shape index: {}]   ;;  %s778_s2 = inlined_call_operand.vmem [shape: f32[8,840], index: 2, kind: input, shape index: {}]   ;;  %s779_s3 = inlined_call_operand.hbm [shape: f32[8,1230], index: 3, kind: output, shape index: {}]  }
   0x1   :  { %v155_v0 = vld [vmem:[%s776_s0] sm:$0xff]  ;;  %v156_v1 = vld [vmem:[%s776_s0 + $0x8] sm:$0xff]  ;;  %v157_v2 = vld [vmem:[%s776_s0 + $0x10] sm:$0xff] }
   0x2   :  { %v158_v3 = vld [vmem:[%s776_s0 + $0x18] sm:$0xff]  ;;  %vm168_vm0 = vcmp.ne.f32.partialorder %v155_v0, %v155_v0  ;;  %v159_v4 = vld [vmem:[%s776_s0 + $0x20] sm:$0xff]  ;;  %vm169_vm1 = vcmp.ne.f32.partialorder %v156_v1, %v156_v1  ;;  %v160_v5 = vld [vmem:[%s776_s0 + $0x28] sm:$0xff]  ;;  %vm170_vm2 = vcmp.ne.f32.partialorder %v157_v2, %v157_v2 }
   0x3   :  { %vm171_vm3 = vcmp.ne.f32.partialorder %v158_v3, %v158_v3  ;;  %vm181_vm5 = vmxor %vm168_vm0, %vm572_vm4  ;;  %v161_v6 = vld [vmem:[%s776_s0 + $0x30] sm:$0xff]  ;;  %vm172_vm6 = vcmp.ne.f32.partialorder %v159_v4, %v159_v4  ;;  %vm173_vm8 = vcmp.ne.f32.partialorder %v160_v5, %v160_v5  ;;  %v162_v13 = vld [vmem:[%s776_s0 + $0x38] sm:$0xff] }
   0x4   :  { %vm182_vm7 = vmxor %vm169_vm1, %vm572_vm4  ;;  %v491_v8 = vsel %vm181_vm5, 1.0, %v573_v7  ;;  %v194_v9 = vsel %vm181_vm5, %v155_v0, 0.0  ;;  %vm174_vm11 = vcmp.ne.f32.partialorder %v161_v6, %v161_v6  ;;  %v163_v21 = vld [vmem:[%s776_s0 + $0x40] sm:$0xff]  ;;  %v164_v24 = vld [vmem:[%s776_s0 + $0x48] sm:$0xff]  ;;  %vm175_vm14 = vcmp.ne.f32.partialorder %v162_v13, %v162_v13 }
   0x5   :  { %vm183_vm9 = vmxor %vm170_vm2, %vm572_vm4  ;;  %v492_v10 = vsel %vm182_vm7, 1.0, %v573_v7  ;;  %v195_v11 = vsel %vm182_vm7, %v156_v1, 0.0  ;;  %v287_v12 = vmul.f32 %v194_v9, %v194_v9  ;;  %v165_v30 = vld [vmem:[%s776_s0 + $0x50] sm:$0xff]  ;;  %vm176_vm0 = vcmp.ne.f32.partialorder %v163_v21, %v163_v21  ;;  %v166_v36 = vld [vmem:[%s776_s0 + $0x58] sm:$0xff] }
   0x6   :  { %vm184_vm10 = vmxor %vm171_vm3, %vm572_vm4  ;;  %v493_v14 = vsel %vm183_vm9, 1.0, %v573_v7  ;;  %v234_v15 = vadd.f32 %v492_v10, %v491_v8  ;;  %v196_v16 = vsel %vm183_vm9, %v157_v2, 0.0  ;;  %v288_v17 = vmul.f32 %v195_v11, %v195_v11  ;;  %v167_v37 = vld [vmem:[%s776_s0 + $0x60] sm:$0xff] }
   0x7   :  { %vm185_vm12 = vmxor %vm172_vm6, %vm572_vm4  ;;  %v494_v18 = vsel %vm184_vm10, 1.0, %v573_v7  ;;  %v197_v19 = vsel %vm184_vm10, %v158_v3, 0.0  ;;  %v289_v20 = vmul.f32 %v196_v16, %v196_v16  ;;  %vm177_vm1 = vcmp.ne.f32.partialorder %v164_v24, %v164_v24 }
   0x8   :  { %vm186_vm13 = vmxor %vm173_vm8, %vm572_vm4  ;;  %v235_v22 = vadd.f32 %v493_v14, %v234_v15  ;;  %v198_v23 = vsel %vm185_vm12, %v159_v4, 0.0  ;;  %v495_v25 = vsel %vm185_vm12, 1.0, %v573_v7  ;;  %v290_v26 = vmul.f32 %v197_v19, %v197_v19 }
   0x9   :  { %v300_v27 = vadd.f32 %v288_v17, %v287_v12  ;;  %vm187_vm15 = vmxor %vm174_vm11, %vm572_vm4  ;;  %v199_v29 = vsel %vm186_vm13, %v160_v5, 0.0  ;;  %v496_v31 = vsel %vm186_vm13, 1.0, %v573_v7  ;;  %v291_v32 = vmul.f32 %v198_v23, %v198_v23 }
   0xa   :  { %v236_v28 = vadd.f32 %v494_v18, %v235_v22  ;;  %vm188_vm2 = vmxor %vm175_vm14, %vm572_vm4  ;;  %v200_v35 = vsel %vm187_vm15, %v161_v6, 0.0  ;;  %v497_v38 = vsel %vm187_vm15, 1.0, %v573_v7  ;;  %v292_v39 = vmul.f32 %v199_v29, %v199_v29 }
   0xb   :  { %v301_v33 = vadd.f32 %v300_v27, %v289_v20  ;;  %v261_v41 = vadd.f32 %v195_v11, %v194_v9  ;;  %vm178_vm3 = vcmp.ne.f32.partialorder %v165_v30, %v165_v30  ;;  %vm189_vm5 = vmxor %vm176_vm0, %vm572_vm4  ;;  %v201_v43 = vsel %vm188_vm2, %v162_v13, 0.0 }
   0xc   :  { %v237_v34 = vadd.f32 %v495_v25, %v236_v28  ;;  %vm663_vm6 = vmxor %vm177_vm1, %vm572_vm4  ;;  %v498_v45 = vsel %vm188_vm2, 1.0, %v573_v7  ;;  %v293_v46 = vmul.f32 %v200_v35, %v200_v35  ;;  %vm179_vm7 = vcmp.ne.f32.partialorder %v166_v36, %v166_v36 }
   0xd   :  { %v302_v40 = vadd.f32 %v301_v33, %v290_v26  ;;  %vm180_vm8 = vcmp.ne.f32.partialorder %v167_v37, %v167_v37  ;;  %v202_v49 = vsel %vm189_vm5, %v163_v21, 0.0 }
   0xe   :  { %v238_v42 = vadd.f32 %v496_v31, %v237_v34 }
   0xf   :  { %v303_v47 = vadd.f32 %v302_v40, %v291_v32 }
  0x10   :  { %v239_v48 = vadd.f32 %v497_v38, %v238_v42 }
  0x11   :  { %8 = vsyncpa [#allocation8], 0  ;;  %v499_v50 = vsel %vm189_vm5, 1.0, %v573_v7  ;;  %v294_v51 = vmul.f32 %v201_v43, %v201_v43  ;;  %v304_v52 = vadd.f32 %v303_v47, %v292_v39  ;;  %v262_v53 = vadd.f32 %v261_v41, %v196_v16  ;;  %s574_s12 = smov 46   ;;  %v73_v31 = vld [vmem:[%s778_s2 + $0x30] sm:$0xff]  ;;  %v72_v33 = vld [vmem:[%s778_s2 + $0x28] sm:$0xff] }
  0x12   :  { %vm191_vm9 = vmxor %vm178_vm3, %vm572_vm4  ;;  %v240_v54 = vadd.f32 %v498_v45, %v239_v48  ;;  %v203_v55 = vsel %vm663_vm6, %v164_v24, 0.0  ;;  %v500_v56 = vsel %vm663_vm6, 1.0, %v573_v7  ;;  %v295_v57 = vmul.f32 %v202_v49, %v202_v49  ;;  %s575_s23 = smov 92   ;;  %s576_s25 = smov 1.0  }
  0x13   :  { %vm193_vm10 = vmxor %vm180_vm8, %vm572_vm4  ;;  %v305_v58 = vadd.f32 %v304_v52, %v293_v46  ;;  %v263_v59 = vadd.f32 %v262_v53, %v197_v19  ;;  %v501_v60 = vsel %vm191_vm9, 1.0, %v573_v7  ;;  %v204_v62 = vsel %vm191_vm9, %v165_v30, 0.0  ;;  %s577_s14 = smov 0.0   ;;  %s578_s19 = smov 14  }
  0x14   :  { %vm192_vm11 = vmxor %vm179_vm7, %vm572_vm4  ;;  %v241_v61 = vadd.f32 %v499_v50, %v240_v54  ;;  %v206_v63 = vsel %vm193_vm10, %v167_v37, 0.0  ;;  %v296_v0 = vmul.f32 %v203_v55, %v203_v55  ;;  %v503_v3 = vsel %vm193_vm10, 1.0, %v573_v7  ;;  %v70_v37 = vld [vmem:[%s778_s2 + $0x18] sm:$0xff]  ;;  %s579_s20 = smov 28   ;;  %s580_s21 = smov 42  }
  0x15   :  { %v306_v1 = vadd.f32 %v305_v58, %v294_v51  ;;  %v264_v2 = vadd.f32 %v263_v59, %v198_v23  ;;  %vm245_vm12 = vcmask 760832   ;;  %v205_v5 = vsel %vm192_vm11, %v166_v36, 0.0  ;;  %v69_v36 = vld [vmem:[%s778_s2 + $0x10] sm:$0xff]  ;;  %s581_s22 = smov 124  }
  0x16   :  { %v242_v4 = vadd.f32 %v500_v56, %v241_v61  ;;  %v502_v6 = vsel %vm192_vm11, 1.0, %v573_v7  ;;  %v297_v8 = vmul.f32 %v204_v62, %v204_v62  ;;  %v299_v12 = vmul.f32 %v206_v63, %v206_v63 }
  0x17   :  { %v307_v9 = vadd.f32 %v306_v1, %v295_v57  ;;  %v265_v10 = vadd.f32 %v264_v2, %v199_v29  ;;  %v246_v13 = vsel %vm245_vm12, %v503_v3, 0.0  ;;  %v298_v14 = vmul.f32 %v205_v5, %v205_v5  ;;  %v71_v29 = vld [vmem:[%s778_s2 + $0x20] sm:$0xff] }
  0x18   :  { %v243_v11 = vadd.f32 %v501_v60, %v242_v4  ;;  %v311_v21 = vsel %vm245_vm12, %v299_v12, 0.0  ;;  %v272_v26 = vsel %vm245_vm12, %v206_v63, 0.0  ;;  %v111_v30 = vmul.f32 %v71_v29, %v71_v29 }
  0x19   :  { %v308_v15 = vadd.f32 %v307_v9, %v296_v0  ;;  %v266_v16 = vadd.f32 %v265_v10, %v200_v35  ;;  %v113_v32 = vmul.f32 %v73_v31, %v73_v31  ;;  %v112_v34 = vmul.f32 %v72_v33, %v72_v33  ;;  %v68_v35 = vld [vmem:[%s778_s2 + $0x8] sm:$0xff] }
  0x1a   :  { %v244_v17 = vadd.f32 %v502_v6, %v243_v11  ;;  %v702_v38 = vmul.f32 %v68_v35, %v68_v35  ;;  %v77_v39 = vmul.f32 %v70_v37, %v70_v37  ;;  %v76_v40 = vmul.f32 %v69_v36, %v69_v36 }
  0x1b   :  { %v309_v18 = vadd.f32 %v308_v15, %v297_v8  ;;  %v267_v19 = vadd.f32 %v266_v16, %v201_v43  ;;  %vm87_vm4 = vcmask 375808   ;;  %vm109_vm6 = vcmask 670720  }
  0x1c   :  { %v247_v20 = vadd.f32 %v246_v13, %v244_v17  ;;  %vm40_vm7 = vcmask 1046528   ;;  %vm46_vm8 = vcmask 113664   ;;  %vm60_vm9 = vcmask 1040384  }
  0x1d   :  { %v310_v22 = vadd.f32 %v309_v18, %v298_v14  ;;  %v268_v23 = vadd.f32 %v267_v19, %v202_v49  ;;  %vm149_vm10 = vcmask 752640  }
  0x1e   :  { %248 = vadd.xlane.f32.xlu0 %v247_v20 }
  0x1f   :  { %v312_v7 = vadd.f32 %v311_v21, %v310_v22  ;;  %v269_v24 = vadd.f32 %v268_v23, %v203_v55  ;;  %v67_v21 = vld [vmem:[%s778_s2] sm:$0xff] }
  0x20   :  { %v74_v22 = vmul.f32 %v67_v21, %v67_v21 }
  0x21   :  { %313 = vadd.xlane.f32.xlu1 %v312_v7  ;;  %v270_v25 = vadd.f32 %v269_v24, %v204_v62 }
  0x23   :  { %v271_v27 = vadd.f32 %v270_v25, %v205_v5 }
  0x25   :  { %v273_v28 = vadd.f32 %v272_v26, %v271_v27 }
  0x27   :  { %274 = vadd.xlane.f32.xlu0 %v273_v28 }
  0x32   :  { %117 = vrot.lane.b32.xlu1 %v111_v30, %s574_s12 }
  0x36   :  { %121 = vrot.lane.b32.xlu1 %v113_v32, %s574_s12 }
  0x3a   :  { %81 = vrot.lane.b32.xlu1 %v702_v38, %s574_s12 }
  0x3d   :  { %119 = vrot.lane.b32.xlu0 %v112_v34, %s574_s12 }
  0x3e   :  { %83 = vrot.lane.b32.xlu1 %v76_v40, %s574_s12  ;;  %v736_v40 = vld [vmem:[%s777_s1 + $0x10] sm:$0xff] }
  0x41   :  { %85 = vrot.lane.b32.xlu0 %v77_v39, %s574_s12 }
  0xa7   :  { %v249_v41 = vpop.xlane.xlu0 %248 }
  0xa8   :  { %v250_v42 = vrot.slane %v249_v41, 4 }
  0xaa   :  { %v251_v43 = vadd.f32 %v250_v42, %v249_v41  ;;  %v314_v44 = vpop.xlane.xlu1 %313  ;;  %v33_v42 = vrot.slane %v736_v40, 1 }
  0xab   :  { %v315_v45 = vrot.slane %v314_v44, 4 }
  0xac   :  { %v252_v46 = vrot.slane %v251_v43, 2 }
  0xad   :  { %v316_v47 = vadd.f32 %v315_v45, %v314_v44 }
  0xae   :  { %v253_v48 = vadd.f32 %v252_v46, %v251_v43  ;;  %v118_v49 = vpop.permute.xlu1 %117  ;;  %v39_v46 = vsub.f32 %v736_v40, %v33_v42 }
  0xaf   :  { %v317_v50 = vrot.slane %v316_v47, 2 }
  0xb0   :  { %v254_v51 = vrot.slane %v253_v48, 1  ;;  %v275_v52 = vpop.xlane.xlu0 %274 }
  0xb1   :  { %v276_v53 = vrot.slane %v275_v52, 4  ;;  %v318_v55 = vadd.f32 %v317_v50, %v316_v47  ;;  %v50_v47 = vsub.f32 0.0, %v39_v46 }
  0xb2   :  { %v255_v54 = vadd.f32 %v254_v51, %v253_v48  ;;  %v122_v56 = vpop.permute.xlu1 %121  ;;  %v43_v51 = vsel %vm40_vm7, %v39_v46, 0.0 }
  0xb3   :  { %v277_v57 = vadd.f32 %v276_v53, %v275_v52  ;;  %v319_v62 = vrot.slane %v318_v55, 1  ;;  %47 = vst.msk [vmem:[#allocation3 + $0x10] sm:$0xff] %vm46_vm8, %v43_v51 }
  0xb4   :  { %509 = vpush %v255_v54  ;;  %v120_v58 = vpop.permute.xlu0 %119 }
  0xb5   :  { %v278_v59 = vrot.slane %v277_v57, 2  ;;  %v123_v60 = vsel %vm87_vm4, %v118_v49, %v120_v58  ;;  %v124_v61 = vsel %vm87_vm4, %v120_v58, %v122_v56  ;;  %v320_v3 = vadd.f32 %v319_v62, %v318_v55 }
  0xb6   :  { %v127_v63 = vadd.f32 %v123_v60, %v77_v39  ;;  %v128_v0 = vadd.f32 %v124_v61, %v111_v30  ;;  %v82_v20 = vpop.permute.xlu1 %81  ;;  %v731_v39 = vld [vmem:[%s777_s1 + $0x8] sm:$0xff]  ;;  %v56_v49 = vrot.slane %v50_v47, 7 }
  0xb7   :  { %v279_v1 = vadd.f32 %v278_v59, %v277_v57  ;;  %v32_v50 = vrot.slane %v731_v39, 1 }
  0xb8   :  { %534 = vrsqrt.f32 %v127_v63  ;;  %vm131_vm13 = vcmp.eq.f32.partialorder %v127_v63, inf  ;;  %v134_v6 = vand.u32 2147483648, %v127_v63  ;;  %vm138_vm14 = vcmp.eq.f32.partialorder %v128_v0, inf  ;;  %v86_v23 = vpop.permute.xlu0 %85 }
  0xb9   :  { %v280_v2 = vrot.slane %v279_v1, 1  ;;  %536 = vrsqrt.f32 %v128_v0  ;;  %v141_v9 = vand.u32 2147483648, %v128_v0  ;;  %vm133_vm15 = vcmp.eq.f32.partialorder %v127_v63, 0.0 }
  0xba   :  { %vm140_vm0 = vcmp.eq.f32.partialorder %v128_v0, 0.0  ;;  %v84_v7 = vpop.permute.xlu1 %83  ;;  %v63_v52 = vsel %vm60_vm9, 0.0, %v56_v49  ;;  %v38_v54 = vsub.f32 %v731_v39, %v32_v50 }
  0xbb   :  { %v281_v4 = vadd.f32 %v280_v2, %v279_v1  ;;  %v88_v24 = vsel %vm87_vm4, %v82_v20, %v84_v7  ;;  %v89_v25 = vsel %vm87_vm4, %v84_v7, %v86_v23  ;;  %66 = vst.msk [vmem:[#allocation4 + $0x10] sm:$0xff] %vm46_vm8, %v63_v52 }
  0xbc   :  { %v92_v26 = vadd.f32 %v88_v24, %v74_v22  ;;  %v93_v27 = vadd.f32 %v89_v25, %v702_v38  ;;  %v726_v38 = vld [vmem:[%s777_s1] sm:$0xff]  ;;  %v49_v56 = vsub.f32 0.0, %v38_v54  ;;  %v42_v61 = vsel %vm40_vm7, %v38_v54, 0.0 }
  0xbd   :  { %511 = vpush %v281_v4  ;;  %v31_v53 = vrot.slane %v726_v38, 1 }
  0xbe   :  { %513 = vpush %v320_v3  ;;  %vm96_vm1 = vcmp.eq.f32.partialorder %v92_v26, inf  ;;  %v99_v29 = vand.u32 2147483648, %v92_v26  ;;  %vm98_vm2 = vcmp.eq.f32.partialorder %v92_v26, 0.0  ;;  %vm103_vm3 = vcmp.eq.f32.partialorder %v93_v27, inf }
  0xbf   :  { %v106_v32 = vand.u32 2147483648, %v93_v27  ;;  %vm105_vm5 = vcmp.eq.f32.partialorder %v93_v27, 0.0  ;;  %v37_v55 = vsub.f32 %v726_v38, %v31_v53  ;;  %v55_v58 = vrot.slane %v49_v56, 7 }
  0xc1   :  { %v48_v57 = vsub.f32 0.0, %v37_v55  ;;  %v62_v62 = vsel %vm60_vm9, 0.0, %v55_v58  ;;  %v41_v1 = vsel %vm40_vm7, %v37_v55, 0.0  ;;  %vm475_vm7 = vcmask 637952  }
  0xc3   :  { %v54_v59 = vrot.slane %v48_v57, 7 }
  0xc5   :  { %v535_v5 = vpop.eup %534 }
  0xc6   :  { %v537_v8 = vpop.eup %536  ;;  %v130_v10 = vmul.f32 %v535_v5, %v127_v63 }
  0xc7   :  { %v137_v11 = vmul.f32 %v537_v8, %v128_v0 }
  0xc8   :  { %v132_v12 = vsel %vm131_vm13, %v127_v63, %v130_v10 }
  0xc9   :  { %v139_v13 = vsel %vm138_vm14, %v128_v0, %v137_v11  ;;  %v135_v14 = vsel %vm133_vm15, %v134_v6, %v132_v12  ;;  %v61_v0 = vsel %vm60_vm9, 0.0, %v54_v59  ;;  %v373_v11 = vld [vmem:[#allocation3 + $0x10] sm:$0xff]  ;;  %vm415_vm14 = vcmask 228352  }
  0xca   :  { %v142_v15 = vsel %vm140_vm0, %v141_v9, %v139_v13  ;;  %145 = vrot.lane.b32.xlu1 %v135_v14, %s575_s23  ;;  %vm427_vm15 = vcmask 343040  }
  0xcb   :  { %147 = vrot.lane.b32.xlu0 %v142_v15, %s575_s23  ;;  %v379_v15 = vld [vmem:[#allocation4 + $0x10] sm:$0xff]  ;;  %s582_s23 = smov [#allocation7]  }
  0xe5   :  { %s707_s24 = spop %509 }
  0xe6   :  { %s332_s26 = smax.f32 %s576_s25, %s707_s24  ;;  %s508_s27 = sadd.f32 -1.0, %s707_s24 }
  0xe7   :  { %v333_v16 = vstv %s332_s26  ;;  %p331_p0 = scmp.gt.f32.partialorder %s707_s24, 0.0  ;;  %s483_s24 = sshll.u32 %s582_s23, 4  ;;  %s484_s24 = int_to_ptr.vmem [resolvable:$true] %s483_s24 }
  0xe8   :  { %538 = vrcp.f32 %v333_v16  ;;  %v342_v17 = vstv %s508_s27  ;;  %s550_s25 = scalar_lea.vmem %s484_s24, 1280  ;;  %p555_p2 = scmp.lt.s32.totalorder %s484_s24, %s484_s24 }
  0xe9   :  { %540 = vrcp.f32 %v342_v17  ;;  %p551_p1 = scmp.ne.s32.totalorder %s484_s24, %s550_s25  ;;  %p556_p3 = scmp.lt.s32.totalorder %s550_s25, %s550_s25 }
  0xea   :  { %542 = vrsqrt.f32 %v92_v26 }
  0xeb   :  { %544 = vrsqrt.f32 %v93_v27  ;;  %p557_p4 = por %p556_p3, %p555_p2 }
  0xed   :  { %p558_p5 = pnand %p557_p4, %p551_p1 }
  0xee   :  { %s512_s2 = spop %511 }
  0xef   :  { %s514_s30 = spop %513 }
  0xf5   :  { %v539_v18 = vpop.eup %538 }
  0xf6   :  { %515 = vpush %v539_v18  ;;  %v541_v19 = vpop.eup %540 }
  0xf7   :  { %517 = vpush %v541_v19  ;;  %v543_v28 = vpop.eup %542 }
  0xf8   :  { %v545_v30 = vpop.eup %544  ;;  %v95_v31 = vmul.f32 %v543_v28, %v92_v26 }
  0xf9   :  { %v102_v33 = vmul.f32 %v545_v30, %v93_v27 }
  0xfa   :  { %v97_v34 = vsel %vm96_vm1, %v92_v26, %v95_v31  ;;  %vm437_vm1 = vcmask 1014784  }
  0xfb   :  { %v717_v35 = vsel %vm98_vm2, %v99_v29, %v97_v34  ;;  %v104_v36 = vsel %vm103_vm3, %v93_v27, %v102_v33 }
  0xfc   :  { %v107_v37 = vsel %vm105_vm5, %v106_v32, %v104_v36 }
  0xfd   :  { %110 = vst.msk [vmem:[#allocation5 + $0x8] sm:$0xff] %vm109_vm6, %v107_v37 }
 0x104   :  { %v384_v23 = vld [vmem:[#allocation5 + $0x8] sm:$0xff] }
 0x127   :  { %s516_s4 = spop %515 }
 0x128   :  { %s336_s5 = smul.f32 %s516_s4, %s512_s2  ;;  %s518_s15 = spop %517 }
 0x12a   :  { %s337_s6 = scalar_select %p331_p0, %s336_s5, 0.0 }
 0x12b   :  { %s338_s12 = smul.f32 %s512_s2, %s336_s5 }
 0x12c   :  { %v738_v41 = vstv %s337_s6 }
 0x12d   :  { %v364_v43 = vsub.f32 %v726_v38, %v738_v41  ;;  %v365_v44 = vsub.f32 %v731_v39, %v738_v41  ;;  %v366_v45 = vsub.f32 %v736_v40, %v738_v41  ;;  %s339_s13 = ssub.f32 %s514_s30, %s338_s12 }
 0x12f   :  { %s340_s1 = smax.f32 %s577_s14, %s339_s13 }
 0x130   :  { %s345_s16 = smul.f32 %s518_s15, %s340_s1 }
 0x132   :  { %v346_v48 = vstv %s345_s16 }
 0x133   :  { %546 = vrsqrt.f32 %v346_v48  ;;  %vm349_vm11 = vcmp.eq.f32.partialorder %v346_v48, inf  ;;  %v352_v5 = vand.u32 2147483648, %v346_v48  ;;  %vm351_vm12 = vcmp.eq.f32.partialorder %v346_v48, 0.0 }
 0x13c   :  { %v146_v60 = vpop.permute.xlu1 %145 }
 0x13d   :  { %v148_v63 = vpop.permute.xlu0 %147 }
 0x13e   :  { %154 = vst.msk [vmem:[#allocation6 + $0x8] sm:$0xff] %vm109_vm6, %v148_v63  ;;  %v150_v2 = vsel %vm149_vm10, %v146_v60, %v148_v63 }
 0x140   :  { %v547_v3 = vpop.eup %546 }
 0x141   :  { %v348_v4 = vmul.f32 %v547_v3, %v346_v48 }
 0x143   :  { %v350_v6 = vsel %vm349_vm11, %v346_v48, %v348_v4 }
 0x144   :  { %v353_v8 = vsel %vm351_vm12, %v352_v5, %v350_v6 }
 0x145   :  { %519 = vpush %v353_v8  ;;  %v388_v27 = vld [vmem:[#allocation6 + $0x8] sm:$0xff] }
 0x176   :  { %s520_s17 = spop %519 }
 0x177   :  { %s783_s17 = smov (!%p331_p0, %s520_s17), 1.0 }
 0x178   :  { %v356_v9 = vstv %s783_s17 }
 0x179   :  { %548 = vrcp.f32 %v356_v9 }
 0x186   :  { %v549_v10 = vpop.eup %548 }
 0x187   :  { %521 = vpush %v549_v10 }
 0x1b8   :  { %s522_s18 = spop %521 }
 0x1b9   :  { %s785_s18 = smov (!%p331_p0, %s522_s18), 1.0 }
 0x1ba   :  { %v367_v12 = vstv %s785_s18 }
 0x1bb   :  { %v376_v13 = vmul.f32 %v373_v11, %v367_v12  ;;  %v375_v14 = vmul.f32 %v367_v12, %v42_v61  ;;  %v370_v16 = vmul.f32 %v367_v12, %v366_v45  ;;  %v368_v17 = vmul.f32 %v367_v12, %v364_v43 }
 0x1bc   :  { %v369_v18 = vmul.f32 %v367_v12, %v365_v44  ;;  %v382_v19 = vmul.f32 %v379_v15, %v367_v12  ;;  %v381_v20 = vmul.f32 %v367_v12, %v62_v62  ;;  %v386_v7 = vmul.f32 %v384_v23, %v367_v12 }
 0x1bd   :  { %398 = vrot.lane.b32.xlu0 %v376_v13, %s578_s19  ;;  %396 = vrot.lane.b32.xlu1 %v375_v14, %s578_s19  ;;  %vm446_vm4 = vcmp.ne.f32.partialorder %v368_v17, %v368_v17  ;;  %v385_v24 = vmul.f32 %v367_v12, %v717_v35  ;;  %v380_v25 = vmul.f32 %v367_v12, %v61_v0 }
 0x1be   :  { %vm447_vm13 = vcmp.ne.f32.partialorder %v369_v18, %v369_v18  ;;  %v456_v21 = vsel %vm446_vm4, 0.0, %v368_v17  ;;  %v374_v26 = vmul.f32 %v367_v12, %v41_v1  ;;  %v390_v28 = vmul.f32 %v388_v27, %v367_v12 }
 0x1bf   :  { %v457_v22 = vsel %vm447_vm13, 0.0, %v369_v18  ;;  %466 = vst [vmem:[#allocation7] sm:$0xff] %v456_v21  ;;  %v389_v29 = vmul.f32 %v367_v12, %v150_v2 }
 0x1c0   :  { %467 = vst [vmem:[#allocation7 + $0x8] sm:$0xff] %v457_v22 }
 0x1c1   :  { %413 = vrot.lane.b32.xlu0 %v382_v19, %s579_s20  ;;  %411 = vrot.lane.b32.xlu1 %v381_v20, %s579_s20 }
 0x1c5   :  { %425 = vrot.lane.b32.xlu0 %v386_v7, %s580_s21  ;;  %423 = vrot.lane.b32.xlu1 %v385_v24, %s580_s21 }
 0x1c9   :  { %409 = vrot.lane.b32.xlu0 %v380_v25, %s579_s20  ;;  %394 = vrot.lane.b32.xlu1 %v374_v26, %s578_s19 }
 0x1cd   :  { %435 = vrot.lane.b32.xlu0 %v390_v28, %s581_s22  ;;  %433 = vrot.lane.b32.xlu1 %v389_v29, %s581_s22 }
 0x22f   :  { %v399_v30 = vpop.permute.xlu0 %398  ;;  %v397_v31 = vpop.permute.xlu1 %396 }
 0x230   :  { %v402_v39 = vsel %vm46_vm8, %v397_v31, %v399_v30 }
 0x233   :  { %v414_v32 = vpop.permute.xlu0 %413  ;;  %v412_v33 = vpop.permute.xlu1 %411 }
 0x234   :  { %v417_v34 = vsel %vm415_vm14, %v412_v33, %v414_v32 }
 0x237   :  { %v426_v35 = vpop.permute.xlu0 %425  ;;  %v424_v36 = vpop.permute.xlu1 %423 }
 0x238   :  { %v444_v37 = vsel %vm427_vm15, %v417_v34, %v424_v36  ;;  %v428_v50 = vsel %vm427_vm15, %v424_v36, %v426_v35 }
 0x239   :  { %vm452_vm0 = vcmp.ne.f32.partialorder %v444_v37, %v444_v37 }
 0x23a   :  { %v462_v38 = vsel %vm452_vm0, 0.0, %v444_v37 }
 0x23b   :  { %472 = vst [vmem:[#allocation7 + $0x30] sm:$0xff] %v462_v38  ;;  %v410_v40 = vpop.permute.xlu0 %409  ;;  %v395_v41 = vpop.permute.xlu1 %394 }
 0x23c   :  { %v416_v42 = vsel %vm415_vm14, %v410_v40, %v412_v33  ;;  %v443_v43 = vsel %vm415_vm14, %v402_v39, %v410_v40  ;;  %v401_v44 = vsel %vm46_vm8, %v395_v41, %v397_v31  ;;  %v442_v45 = vsel %vm46_vm8, %v370_v16, %v395_v41 }
 0x23d   :  { %vm450_vm2 = vcmp.ne.f32.partialorder %v443_v43, %v443_v43  ;;  %vm451_vm3 = vcmp.ne.f32.partialorder %v416_v42, %v416_v42  ;;  %vm448_vm5 = vcmp.ne.f32.partialorder %v442_v45, %v442_v45  ;;  %vm449_vm6 = vcmp.ne.f32.partialorder %v401_v44, %v401_v44 }
 0x23e   :  { %v460_v46 = vsel %vm450_vm2, 0.0, %v443_v43  ;;  %v461_v47 = vsel %vm451_vm3, 0.0, %v416_v42  ;;  %v458_v48 = vsel %vm448_vm5, 0.0, %v442_v45  ;;  %v459_v49 = vsel %vm449_vm6, 0.0, %v401_v44 }
 0x23f   :  { %470 = vst [vmem:[#allocation7 + $0x20] sm:$0xff] %v460_v46  ;;  %471 = vst [vmem:[#allocation7 + $0x28] sm:$0xff] %v461_v47  ;;  %v436_v51 = vpop.permute.xlu0 %435  ;;  %v434_v52 = vpop.permute.xlu1 %433 }
 0x240   :  { %468 = vst [vmem:[#allocation7 + $0x10] sm:$0xff] %v458_v48  ;;  %469 = vst [vmem:[#allocation7 + $0x18] sm:$0xff] %v459_v49  ;;  %vm455_vm8 = vcmp.ne.f32.partialorder %v436_v51, %v436_v51  ;;  %v438_v53 = vsel %vm437_vm1, %v434_v52, %v436_v51  ;;  %v445_v54 = vsel %vm437_vm1, %v428_v50, %v434_v52 }
 0x241   :  { %v465_v55 = vsel %vm455_vm8, 0.0, %v436_v51  ;;  %vm453_vm9 = vcmp.ne.f32.partialorder %v445_v54, %v445_v54  ;;  %vm454_vm10 = vcmp.ne.f32.partialorder %v438_v53, %v438_v53 }
 0x242   :  { %476 = vst.msk [vmem:[#allocation7 + $0x48] sm:$0xff] %vm475_vm7, %v465_v55  ;;  %v463_v56 = vsel %vm453_vm9, 0.0, %v445_v54  ;;  %v464_v57 = vsel %vm454_vm10, 0.0, %v438_v53 }
 0x243   :  { %473 = vst [vmem:[#allocation7 + $0x38] sm:$0xff] %v463_v56  ;;  %474 = vst [vmem:[#allocation7 + $0x40] sm:$0xff] %v464_v57 }
 0x244   :  { %561 = shalt.err (!%p558_p5)
}
 0x245   :  { %486 = dma.vmem_to_hbm [thread:$0]  %s484_s24, 1280, %s779_s3, [#allocation8]  }
 0x246   :  { %570 = dma.done.wait [#allocation8], 1280  }
 0x247   :  { %571 = vsyncadd [#allocation8], 4294966016 }
 0x248   :  { %490 = vsyncpa [#allocation8], 1 }

</bundles_post_ra>
